<compile_context>
chip_gen: v6e
topology: v6e:2x2x1
jax: 0.10.0
libtpu: 0.0.40
codegen_flags: <defaults>
</compile_context>

<pallas_src>
import functools

import jax
import jax.numpy as jnp
from jax.experimental import pallas as pl
from jax.experimental.pallas import tpu as pltpu


def _round_up(x, m):
    return (x + m - 1) // m * m


def _split_kernel(x_ref, y_ref, w_ref, b_ref, o_ref, *, dx):
    # Two MXU matmuls accumulated in f32.  The static weight slices are
    # sublane-aligned (dx is padded to a multiple of 8 in the wrapper), so they
    # are free views — no VMEM copies.
    acc = jnp.dot(x_ref[...], w_ref[:dx, :], preferred_element_type=jnp.float32)
    acc = acc + jnp.dot(y_ref[...], w_ref[dx:, :],
                        preferred_element_type=jnp.float32)
    o_ref[...] = (acc + b_ref[...]).astype(o_ref.dtype)


def _fused_kernel(x_ref, y_ref, w_ref, b_ref, o_ref, xy_ref, *, dx):
    # Stage x|y into one (tm, Dx+Dy) VMEM slab (cheap, lane-aligned vst since
    # dx % 128 == 0) and run a single full-depth MXU matmul — halves the number
    # of MXU pushes on 256-deep MXUs (v6e / v7x).
    xy_ref[:, :dx] = x_ref[...]
    xy_ref[:, dx:] = y_ref[...]
    acc = jnp.dot(xy_ref[...], w_ref[...], preferred_element_type=jnp.float32)
    o_ref[...] = (acc + b_ref[...]).astype(o_ref.dtype)


def _prefers_fused_contraction():
    # v6e / v7x MXUs are 256 deep; v4/v5e/v5p are 128 deep -> keep dual K dots.
    try:
        kind = jax.devices()[0].device_kind.lower()
    except Exception:
        return False
    return ("v6" in kind) or ("v7" in kind) or ("tpu7" in kind)


def concat_fusion(x, y, w, b, *, tm_max=256, tn_max=512):
    """ConcatFusion forward: returns (x, y, Linear(cat([x, y], dim=1))).

    x:(B,Dx), y:(B,Dy), w:(Dx+Dy, Dout) (== PyTorch weight.T), b:(Dout,)
    """
    B, dx = x.shape
    _, dy = y.shape
    dout = w.shape[1]
    assert w.shape[0] == dx + dy and b.shape == (dout,)

    x_in, y_in = x, y  # returned untouched, exactly like the PyTorch module

    # Sublane-align the x|y split point so in-kernel weight slices are free
    # views (zero-padded x columns x zero w rows contribute nothing).
    if dx % 8 != 0:
        pad = _round_up(dx, 8) - dx
        x = jnp.pad(x, ((0, 0), (0, pad)))
        w = jnp.concatenate(
            [w[:dx], jnp.zeros((pad, dout), w.dtype), w[dx:]], axis=0)
        dx += pad
    K = dx + dy

    # Pad output/lane axis to a multiple of 128: lane-dense (unmasked) stores
    # and full-width MXU result tiles.  Zero-padded W/b columns give zero
    # output columns which are sliced off afterwards.
    n_pad = _round_up(dout, 128)
    if n_pad != dout:
        w = jnp.pad(w, ((0, 0), (0, n_pad - dout)))
        b = jnp.pad(b, (0, n_pad - dout))
    b2 = b.reshape(1, n_pad)

    # Tile sizes: biggest that comfortably fits VMEM (incl. v7x's 64 MiB).
    tm = B if B <= tm_max else tm_max
    tn = n_pad if n_pad <= tn_max else tn_max
    n_i = pl.cdiv(B, tm)       # batch tiles       (inner grid axis)
    n_j = pl.cdiv(n_pad, tn)   # output-feat tiles (outer grid axis)

    use_fused = _prefers_fused_contraction() and (dx % 128 == 0)
    if use_fused:
        kernel = functools.partial(_fused_kernel, dx=dx)
        scratch_shapes = [pltpu.VMEM((tm, K), x.dtype)]
    else:
        kernel = functools.partial(_split_kernel, dx=dx)
        scratch_shapes = []

    itemsize = jnp.dtype(x.dtype).itemsize
    # Double-buffered inputs/outputs + scratch slab; generous headroom but
    # bounded well below v7x's 64 MiB physical VMEM.
    vmem_bytes = 2 * (tm * dx + tm * dy + K * tn + tn + tm * tn) * itemsize
    if use_fused:
        vmem_bytes += tm * K * itemsize
    vmem_limit = int(min(max(2 * vmem_bytes, 4 << 20), 48 << 20))

    cost = pl.CostEstimate(
        flops=2 * B * K * n_pad,
        transcendentals=0,
        bytes_accessed=(B * dx + B * dy + K * n_pad + n_pad + B * n_pad)
        * itemsize,
    )

    out = pl.pallas_call(
        kernel,
        out_shape=jax.ShapeDtypeStruct((B, n_pad), x.dtype),
        grid_spec=pltpu.PrefetchScalarGridSpec(
            num_scalar_prefetch=0,
            # Grid order (j, i): batch tiles are the inner axis, so the weight
            # and bias block indices are constant across it (no re-DMA of W).
            grid=(n_j, n_i),
            in_specs=[
                pl.BlockSpec((tm, dx), lambda j, i: (i, 0)),
                pl.BlockSpec((tm, dy), lambda j, i: (i, 0)),
                pl.BlockSpec((K, tn), lambda j, i: (0, j)),
                pl.BlockSpec((1, tn), lambda j, i: (0, j)),
            ],
            out_specs=pl.BlockSpec((tm, tn), lambda j, i: (i, j)),
            scratch_shapes=scratch_shapes,
        ),
        compiler_params=pltpu.CompilerParams(
            dimension_semantics=("parallel", "parallel"),
            vmem_limit_bytes=vmem_limit,
        ),
        cost_estimate=cost,
    )(x, y, w, b2)

    if n_pad != dout:
        out = out[:, :dout]

    # TODO(synk): at tiny B this op is latency-bound; real wins come from
    # fusing into the adjacent producer/consumer kernel or batching more rows.
    return x_in, y_in, out


if __name__ == "__main__":
    key = jax.random.PRNGKey(0)
    kx, ky, kw, kb = jax.random.split(key, 4)

    # Small shapes consistent with the module: input_dim = Dx + Dy, output_dim.
    B, Dx, Dy, Dout = 8, 128, 128, 100

    x = jax.random.normal(kx, (B, Dx), dtype=jnp.float32)
    y = jax.random.normal(ky, (B, Dy), dtype=jnp.float32)
    # Synthetic Linear params (PyTorch weight has layout (out, in); we pass W.T).
    w = jax.random.normal(kw, (Dx + Dy, Dout), dtype=jnp.float32) * 0.02
    b = jax.random.normal(kb, (Dout,), dtype=jnp.float32) * 0.02

    xo, yo, out = concat_fusion(x, y, w, b)
    jax.block_until_ready(out)

    # Reference check: Linear(cat(x, y)).
    ref = jnp.concatenate([x, y], axis=1) @ w + b
    assert out.shape == (B, Dout)
    assert jnp.allclose(out, ref, atol=1e-4, rtol=1e-4)
    assert jnp.array_equal(xo, x) and jnp.array_equal(yo, y)

    print("KERNEL_OK")
</pallas_src>

<mosaic_0001>
module attributes {stable_mosaic.version = 11 : i64} {
  func.func @_split_kernel(%arg0: i32, %arg1: i32, %arg2: memref<8x128xf32, #tpu.memory_space<vmem>>, %arg3: memref<8x128xf32, #tpu.memory_space<vmem>>, %arg4: memref<256x128xf32, #tpu.memory_space<vmem>>, %arg5: memref<1x128xf32, #tpu.memory_space<vmem>>, %arg6: memref<8x128xf32, #tpu.memory_space<vmem>>) attributes {dimension_semantics = [#tpu.dimension_semantics<parallel>, #tpu.dimension_semantics<parallel>], iteration_bounds = array<i64: 1, 1>, scalar_prefetch = 0 : i64, scratch_operands = 0 : i64, tpu.core_type = #tpu.core_type<tc>, window_params = [{transform_indices = @transform_0, window_bounds = array<i64: 8, 128>}, {transform_indices = @transform_1, window_bounds = array<i64: 8, 128>}, {transform_indices = @transform_2, window_bounds = array<i64: 256, 128>}, {transform_indices = @transform_3, window_bounds = array<i64: 1, 128>}, {transform_indices = @transform_4, window_bounds = array<i64: 8, 128>}]} {
    %c0 = arith.constant 0 : index
    %c0_0 = arith.constant 0 : index
    %0 = vector.load %arg2[%c0, %c0_0] : memref<8x128xf32, #tpu.memory_space<vmem>>, vector<8x128xf32>
    %c0_1 = arith.constant 0 : index
    %c0_2 = arith.constant 0 : index
    %1 = vector.load %arg4[%c0_1, %c0_2] : memref<256x128xf32, #tpu.memory_space<vmem>>, vector<128x128xf32>
    %cst = arith.constant dense<0.000000e+00> : vector<8x128xf32>
    %2 = tpu.matmul %0, %1, %cst {dimension_numbers = #tpu.dot_dimension_numbers<[1], [0], [0], [1], [0, 0, 1, 1], [], []>} : vector<8x128xf32>, vector<128x128xf32>, vector<8x128xf32> -> vector<8x128xf32>
    %c0_3 = arith.constant 0 : index
    %c0_4 = arith.constant 0 : index
    %3 = vector.load %arg3[%c0_3, %c0_4] : memref<8x128xf32, #tpu.memory_space<vmem>>, vector<8x128xf32>
    %c128 = arith.constant 128 : index
    %c0_5 = arith.constant 0 : index
    %4 = vector.load %arg4[%c128, %c0_5] : memref<256x128xf32, #tpu.memory_space<vmem>>, vector<128x128xf32>
    %cst_6 = arith.constant dense<0.000000e+00> : vector<8x128xf32>
    %5 = tpu.matmul %3, %4, %cst_6 {dimension_numbers = #tpu.dot_dimension_numbers<[1], [0], [0], [1], [0, 0, 1, 1], [], []>} : vector<8x128xf32>, vector<128x128xf32>, vector<8x128xf32> -> vector<8x128xf32>
    %6 = arith.addf %2, %5 : vector<8x128xf32>
    %c0_7 = arith.constant 0 : index
    %c0_8 = arith.constant 0 : index
    %7 = vector.load %arg5[%c0_7, %c0_8] : memref<1x128xf32, #tpu.memory_space<vmem>>, vector<1x128xf32>
    %8 = vector.broadcast %7 : vector<1x128xf32> to vector<8x128xf32>
    %9 = arith.addf %6, %8 : vector<8x128xf32>
    %c0_9 = arith.constant 0 : index
    %c0_10 = arith.constant 0 : index
    %10 = vector.load %arg6[%c0_9, %c0_10] : memref<8x128xf32, #tpu.memory_space<vmem>>, vector<8x128xf32>
    tpu.vector_store %arg6[%c0_9, %c0_10], %9 {strides = array<i32>} : memref<8x128xf32, #tpu.memory_space<vmem>>, vector<8x128xf32>,
    return
  }
  func.func @transform_0(%arg0: i32, %arg1: i32) -> (i32, i32) {
    %c0_i32 = arith.constant 0 : i32
    %c0_i32_0 = arith.constant 0 : i32
    return %arg1, %c0_i32 : i32, i32
  }
  func.func @transform_1(%arg0: i32, %arg1: i32) -> (i32, i32) {
    %c0_i32 = arith.constant 0 : i32
    %c0_i32_0 = arith.constant 0 : i32
    return %arg1, %c0_i32 : i32, i32
  }
  func.func @transform_2(%arg0: i32, %arg1: i32) -> (i32, i32) {
    %c0_i32 = arith.constant 0 : i32
    %c0_i32_0 = arith.constant 0 : i32
    return %c0_i32, %arg0 : i32, i32
  }
  func.func @transform_3(%arg0: i32, %arg1: i32) -> (i32, i32) {
    %c0_i32 = arith.constant 0 : i32
    %c0_i32_0 = arith.constant 0 : i32
    return %c0_i32, %arg0 : i32, i32
  }
  func.func @transform_4(%arg0: i32, %arg1: i32) -> (i32, i32) {
    %c0_i32 = arith.constant 0 : i32
    return %arg1, %arg0 : i32, i32
  }
}

</mosaic_0001>

<bundles_post_ra>
// kernel: tpu_custom_call.1
= control target key start
LH: loop header
LB: loop body
LE: loop exit
PB: predicated region body
PF: predicated region fallthrough
CT: control target
= control target key end

     0   :  { %9 = vsyncpa [#allocation3], 0  ;;  %s535_s0 = inlined_call_operand.hbm [shape: f32[8,128], index: 0, kind: input, shape index: {}]   ;;  %s536_s1 = inlined_call_operand.hbm [shape: f32[8,128], index: 1, kind: input, shape index: {}]   ;;  %s537_s2 = inlined_call_operand.hbm [shape: f32[256,128], index: 2, kind: input, shape index: {}]   ;;  %s538_s3 = inlined_call_operand.vmem [shape: f32[1,128], index: 3, kind: input, shape index: {}]   ;;  %s539_s4 = inlined_call_operand.hbm [shape: f32[8,128], index: 4, kind: output, shape index: {}]  }
   0x1   :  { %10 = vsyncpa [#allocation6], 0 }
   0x2   :  { %11 = vsyncpa [#allocation4], 0  ;;  %s453_s15 = smov [#allocation5]   ;;  %s454_s17 = smov [#allocation2]  }
   0x3   :  { %s28_s16 = sshll.u32 %s453_s15, 4  ;;  %s18_s18 = sshll.u32 %s454_s17, 4  ;;  %s29_s16 = int_to_ptr.vmem [resolvable:$true] %s28_s16  ;;  %s19_s18 = int_to_ptr.vmem [resolvable:$true] %s18_s18 }
   0x4   :  { %s375_s19 = scalar_lea.vmem %s29_s16, 128  ;;  %p380_p1 = scmp.lt.s32.totalorder %s29_s16, %s29_s16 }
   0x5   :  { %p376_p0 = scmp.ne.s32.totalorder %s29_s16, %s375_s19  ;;  %p381_p2 = scmp.lt.s32.totalorder %s375_s19, %s375_s19 }
   0x7   :  { %p382_p3 = por %p381_p2, %p380_p1 }
   0x9   :  { %p383_p4 = pnand %p382_p3, %p376_p0 }
   0xb   :  { %386 = shalt.err (!%p383_p4)
}
   0xc   :  { %31 = dma.hbm_to_vmem [thread:$0]  %s536_s1, 128, %s29_s16, [#allocation6]  }
   0xd   :  { %s395_s22 = scalar_lea.vmem %s19_s18, 128  ;;  %p400_p6 = scmp.lt.s32.totalorder %s19_s18, %s19_s18 }
   0xe   :  { %p396_p5 = scmp.ne.s32.totalorder %s19_s18, %s395_s22  ;;  %p401_p7 = scmp.lt.s32.totalorder %s395_s22, %s395_s22 }
  0x10   :  { %p402_p8 = por %p401_p7, %p400_p6 }
  0x12   :  { %p403_p9 = pnand %p402_p8, %p396_p5 }
  0x14   :  { %406 = shalt.err (!%p403_p9)
}
  0x15   :  { %21 = dma.hbm_to_vmem [thread:$0]  %s535_s0, 128, %s19_s18, [#allocation3]  }
  0x16   :  { %s455_s25 = smov [#allocation7]  }
  0x17   :  { %s37_s26 = sshll.u32 %s455_s25, 4  ;;  %s38_s26 = int_to_ptr.vmem [resolvable:$true] %s37_s26 }
  0x18   :  { %s415_s27 = scalar_lea.vmem %s38_s26, 4096  ;;  %p420_p11 = scmp.lt.s32.totalorder %s38_s26, %s38_s26 }
  0x19   :  { %p416_p10 = scmp.ne.s32.totalorder %s38_s26, %s415_s27  ;;  %p421_p12 = scmp.lt.s32.totalorder %s415_s27, %s415_s27 }
  0x1b   :  { %p422_p13 = por %p421_p12, %p420_p11 }
  0x1d   :  { %p423_p0 = pnand %p422_p13, %p416_p10 }
  0x1f   :  { %426 = shalt.err (!%p423_p0)
}
  0x20   :  { %s456_s1 = smov 128   ;;  %s457_s28 = smov 8  }
  0x21   :  { %43 = dma.hbm_to_vmem [thread:$0]  %s537_s2, 4096, %s38_s26, [#allocation6], %s456_s1, %s456_s1, %s457_s28  }
  0x22   :  { %447 = dma.done.wait [#allocation3], 128  }
  0x23   :  { %448 = vsyncadd [#allocation3], 4294967168 }
  0x24   :  { %449 = dma.done.wait [#allocation6], 4224  }
  0x25   :  { %450 = vsyncadd [#allocation6], 4294963072  ;;  %v458_v0 = vmov 0.0   ;;  %vm459_vm0 = vmmov 0   ;;  %v88_v1 = vld [vmem:[#allocation7 + $0xf8] sm:$0xff]  ;;  %v87_v3 = vld [vmem:[#allocation7 + $0xf0] sm:$0xff] }
  0x26   :  { %289 = vmatprep.subr.mxu0 %v458_v0  ;;  %324 = vmatprep.subr.mxu1 %v458_v0  ;;  %v71_v2 = vld [vmem:[#allocation7 + $0x78] sm:$0xff]  ;;  %v70_v4 = vld [vmem:[#allocation7 + $0x70] sm:$0xff]  ;;  %v86_v5 = vld [vmem:[#allocation7 + $0xe8] sm:$0xff]  ;;  %s460_s5 = smov [#allocation8]  }
  0x27   :  { %321 = vmatprep.mubr.msk.f32.mxu0 %vm459_vm0, %v458_v0  ;;  %356 = vmatprep.mubr.msk.f32.mxu1 %vm459_vm0, %v458_v0  ;;  %v69_v6 = vld [vmem:[#allocation7 + $0x68] sm:$0xff]  ;;  %v85_v7 = vld [vmem:[#allocation7 + $0xe0] sm:$0xff]  ;;  %v84_v9 = vld [vmem:[#allocation7 + $0xd8] sm:$0xff]  ;;  %s244_s6 = sshll.u32 %s460_s5, 4  ;;  %s245_s6 = int_to_ptr.vmem [resolvable:$true] %s244_s6 }
  0x28   :  { %290 = vmatpush3.msra.mxu0 %v88_v1  ;;  %325 = vmatpush3.msra.mxu1 %v71_v2  ;;  %v68_v8 = vld [vmem:[#allocation7 + $0x60] sm:$0xff]  ;;  %v67_v10 = vld [vmem:[#allocation7 + $0x58] sm:$0xff]  ;;  %v83_v11 = vld [vmem:[#allocation7 + $0xd0] sm:$0xff]  ;;  %s427_s7 = scalar_lea.vmem %s245_s6, 128  ;;  %p432_p2 = scmp.lt.s32.totalorder %s245_s6, %s245_s6 }
  0x29   :  { %291 = vmatprep.subr.mxu0 %v458_v0  ;;  %326 = vmatprep.subr.mxu1 %v458_v0  ;;  %v66_v12 = vld [vmem:[#allocation7 + $0x50] sm:$0xff]  ;;  %v82_v13 = vld [vmem:[#allocation7 + $0xc8] sm:$0xff]  ;;  %v81_v15 = vld [vmem:[#allocation7 + $0xc0] sm:$0xff]  ;;  %p428_p1 = scmp.ne.s32.totalorder %s245_s6, %s427_s7  ;;  %p433_p3 = scmp.lt.s32.totalorder %s427_s7, %s427_s7 }
  0x2a   :  { %292 = vmatpush3.msra.mxu0 %v87_v3  ;;  %327 = vmatpush3.msra.mxu1 %v70_v4  ;;  %v65_v14 = vld [vmem:[#allocation7 + $0x48] sm:$0xff]  ;;  %v64_v16 = vld [vmem:[#allocation7 + $0x40] sm:$0xff]  ;;  %v80_v17 = vld [vmem:[#allocation7 + $0xb8] sm:$0xff] }
  0x2b   :  { %293 = vmatprep.subr.mxu0 %v458_v0  ;;  %328 = vmatprep.subr.mxu1 %v458_v0  ;;  %v63_v18 = vld [vmem:[#allocation7 + $0x38] sm:$0xff]  ;;  %v79_v19 = vld [vmem:[#allocation7 + $0xb0] sm:$0xff]  ;;  %v78_v21 = vld [vmem:[#allocation7 + $0xa8] sm:$0xff]  ;;  %p434_p4 = por %p433_p3, %p432_p2 }
  0x2c   :  { %294 = vmatpush3.msra.mxu0 %v86_v5  ;;  %329 = vmatpush3.msra.mxu1 %v69_v6  ;;  %v62_v20 = vld [vmem:[#allocation7 + $0x30] sm:$0xff]  ;;  %v61_v22 = vld [vmem:[#allocation7 + $0x28] sm:$0xff]  ;;  %v77_v23 = vld [vmem:[#allocation7 + $0xa0] sm:$0xff] }
  0x2d   :  { %295 = vmatprep.subr.mxu0 %v458_v0  ;;  %330 = vmatprep.subr.mxu1 %v458_v0  ;;  %v60_v24 = vld [vmem:[#allocation7 + $0x20] sm:$0xff]  ;;  %v76_v25 = vld [vmem:[#allocation7 + $0x98] sm:$0xff]  ;;  %v75_v27 = vld [vmem:[#allocation7 + $0x90] sm:$0xff]  ;;  %p435_p5 = pnand %p434_p4, %p428_p1 }
  0x2e   :  { %296 = vmatpush3.msra.mxu0 %v85_v7  ;;  %331 = vmatpush3.msra.mxu1 %v68_v8  ;;  %v59_v26 = vld [vmem:[#allocation7 + $0x18] sm:$0xff]  ;;  %v58_v28 = vld [vmem:[#allocation7 + $0x10] sm:$0xff]  ;;  %v74_v29 = vld [vmem:[#allocation7 + $0x88] sm:$0xff] }
  0x2f   :  { %297 = vmatprep.subr.mxu0 %v458_v0  ;;  %332 = vmatprep.subr.mxu1 %v458_v0  ;;  %v57_v30 = vld [vmem:[#allocation7 + $0x8] sm:$0xff]  ;;  %v73_v31 = vld [vmem:[#allocation7 + $0x80] sm:$0xff]  ;;  %v72_v33 = vld [vmem:[#allocation5] sm:$0xff] }
  0x30   :  { %298 = vmatpush3.msra.mxu0 %v84_v9  ;;  %333 = vmatpush3.msra.mxu1 %v67_v10  ;;  %v56_v32 = vld [vmem:[#allocation7] sm:$0xff]  ;;  %v55_v34 = vld [vmem:[#allocation2] sm:$0xff] }
  0x31   :  { %299 = vmatprep.subr.mxu0 %v458_v0  ;;  %334 = vmatprep.subr.mxu1 %v458_v0  ;;  %v254_v37 = vld [vmem:[%s538_s3] ss:$0 sm:$0xff] }
  0x32   :  { %300 = vmatpush3.msra.mxu0 %v83_v11  ;;  %335 = vmatpush3.msra.mxu1 %v66_v12 }
  0x33   :  { %301 = vmatprep.subr.mxu0 %v458_v0  ;;  %336 = vmatprep.subr.mxu1 %v458_v0 }
  0x34   :  { %302 = vmatpush3.msra.mxu0 %v82_v13  ;;  %337 = vmatpush3.msra.mxu1 %v65_v14 }
  0x35   :  { %303 = vmatprep.subr.mxu0 %v458_v0  ;;  %338 = vmatprep.subr.mxu1 %v458_v0 }
  0x36   :  { %304 = vmatpush3.msra.mxu0 %v81_v15  ;;  %339 = vmatpush3.msra.mxu1 %v64_v16 }
  0x37   :  { %305 = vmatprep.subr.mxu0 %v458_v0  ;;  %340 = vmatprep.subr.mxu1 %v458_v0 }
  0x38   :  { %306 = vmatpush3.msra.mxu0 %v80_v17  ;;  %341 = vmatpush3.msra.mxu1 %v63_v18 }
  0x39   :  { %307 = vmatprep.subr.mxu0 %v458_v0  ;;  %342 = vmatprep.subr.mxu1 %v458_v0 }
  0x3a   :  { %308 = vmatpush3.msra.mxu0 %v79_v19  ;;  %343 = vmatpush3.msra.mxu1 %v62_v20 }
  0x3b   :  { %309 = vmatprep.subr.mxu0 %v458_v0  ;;  %344 = vmatprep.subr.mxu1 %v458_v0 }
  0x3c   :  { %310 = vmatpush3.msra.mxu0 %v78_v21  ;;  %345 = vmatpush3.msra.mxu1 %v61_v22 }
  0x3d   :  { %311 = vmatprep.subr.mxu0 %v458_v0  ;;  %346 = vmatprep.subr.mxu1 %v458_v0 }
  0x3e   :  { %312 = vmatpush3.msra.mxu0 %v77_v23  ;;  %347 = vmatpush3.msra.mxu1 %v60_v24 }
  0x3f   :  { %313 = vmatprep.subr.mxu0 %v458_v0  ;;  %348 = vmatprep.subr.mxu1 %v458_v0 }
  0x40   :  { %314 = vmatpush3.msra.mxu0 %v76_v25  ;;  %349 = vmatpush3.msra.mxu1 %v59_v26 }
  0x41   :  { %315 = vmatprep.subr.mxu0 %v458_v0  ;;  %350 = vmatprep.subr.mxu1 %v458_v0 }
  0x42   :  { %316 = vmatpush3.msra.mxu0 %v75_v27  ;;  %351 = vmatpush3.msra.mxu1 %v58_v28 }
  0x43   :  { %317 = vmatprep.subr.mxu0 %v458_v0  ;;  %352 = vmatprep.subr.mxu1 %v458_v0 }
  0x44   :  { %318 = vmatpush3.msra.mxu0 %v74_v29  ;;  %353 = vmatpush3.msra.mxu1 %v57_v30 }
  0x45   :  { %319 = vmatprep.subr.mxu0 %v458_v0  ;;  %354 = vmatprep.subr.mxu1 %v458_v0 }
  0x46   :  { %320 = vmatpush3.msra.mxu0 %v73_v31  ;;  %355 = vmatpush3.msra.mxu1 %v56_v32 }
  0x47   :  { %322 = vmatmul.mubr.f32.vlgmr.msra.gmra.mxu0 %v72_v33  ;;  %357 = vmatmul.mubr.f32.vlgmr.msra.gmra.mxu1 %v55_v34 }
 0x107   :  { %v155_v35 = vpop.f32.mrf.mxu0  ;;  %v225_v36 = vpop.f32.mrf.mxu1 }
 0x108   :  { %v226_v38 = vadd.f32 %v225_v36, %v155_v35 }
 0x109   :  { %v323_v39 = vpop.f32.mrf.mxu0  ;;  %v358_v40 = vpop.f32.mrf.mxu1 }
 0x10a   :  { %v236_v41 = vadd.f32 %v254_v37, %v226_v38 }
 0x10c   :  { %237 = vst [vmem:[#allocation8] sm:$0xff] %v236_v41 }
 0x10d   :  { %438 = shalt.err (!%p435_p5)
}
 0x10e   :  { %247 = dma.vmem_to_hbm [thread:$0]  %s245_s6, 128, %s539_s4, [#allocation4]  }
 0x10f   :  { %451 = dma.done.wait [#allocation4], 128  }
 0x110   :  { %452 = vsyncadd [#allocation4], 4294967168 }
 0x111   :  { %251 = vsyncpa [#allocation3], 1 }
 0x112   :  { %252 = vsyncpa [#allocation6], 1 }
 0x113   :  { %253 = vsyncpa [#allocation4], 1 }

</bundles_post_ra>
